<compile_context>
chip_gen: v7x
topology: tpu7x:2x2x1
jax: 0.10.0
libtpu: 0.0.40
codegen_flags: <defaults>
</compile_context>

<pallas_src>
import jax
import jax.numpy as jnp
from jax.experimental import pallas as pl
from jax.experimental.pallas import tpu as pltpu


def _disc_kernel(x_ref, w1_ref, b1_ref, w2_ref, b2_ref, w3_ref, b3_ref, o_ref):
    # layer 1: Linear (bf16 MXU inputs, f32 accumulate) + Dropout(identity) + ReLU
    h1 = jnp.dot(x_ref[...], w1_ref[...], preferred_element_type=jnp.float32)
    h1 = jnp.maximum(h1 + b1_ref[...], 0.0)

    # layer 2: Linear + Dropout(identity) + ReLU (cast activations back to bf16 for MXU)
    h2 = jnp.dot(h1.astype(jnp.bfloat16), w2_ref[...], preferred_element_type=jnp.float32)
    h2 = jnp.maximum(h2 + b2_ref[...], 0.0)

    # layer 3: Linear(D -> 1) as a (1, D) x (tb, D)^T contraction -> (1, tb).
    # The result lands lane-major, so the output write is a small lane-dense row
    # instead of a masked (tb, 1) column or a broadcast slab.
    out_row = jnp.einsum(
        "od,td->ot", w3_ref[...], h2, preferred_element_type=jnp.float32
    )
    o_ref[...] = (out_row + b3_ref[...]).astype(o_ref.dtype)


def _round_up(n, m):
    return ((n + m - 1) // m) * m


def discriminator_forward(x, params, *, tb=256):
    """x: (B, D) float32. params: dict of w1,b1,w2,b2,w3,b3 (weights stored (in, out)).

    Returns (B, 1) float32 (same semantics as the PyTorch module's forward in eval mode).
    """
    B, D = x.shape

    # bf16 matmul inputs, f32 biases / final-layer weights
    w1 = params["w1"].astype(jnp.bfloat16)
    w2 = params["w2"].astype(jnp.bfloat16)
    b1 = params["b1"].reshape(1, D).astype(jnp.float32)
    b2 = params["b2"].reshape(1, D).astype(jnp.float32)
    w3_row = params["w3"].reshape(1, D).astype(jnp.float32)
    b3 = params["b3"].reshape(1, 1).astype(jnp.float32)

    # Batch tile: multiple of 16 (bf16 sublane packing); clamp for small batches and
    # pad B up to a tile multiple so any batch size works.
    tb = _round_up(max(tb, 16), 16)
    tb_eff = max(16, min(tb, _round_up(B, 16)))
    b_pad = _round_up(B, tb_eff)

    xb = x.astype(jnp.bfloat16)
    if b_pad != B:
        xb = jnp.pad(xb, ((0, b_pad - B), (0, 0)))

    grid = (b_pad // tb_eff,)

    # Constant-index weights/biases: single-buffered, DMA'd once, resident in VMEM.
    def const_spec(shape):
        return pl.BlockSpec(shape, lambda i: (0, 0), pipeline_mode=pl.Buffered(1))

    out_row = pl.pallas_call(
        _disc_kernel,
        out_shape=jax.ShapeDtypeStruct((1, b_pad), jnp.float32),
        grid_spec=pltpu.PrefetchScalarGridSpec(
            num_scalar_prefetch=0,
            grid=grid,
            in_specs=[
                pl.BlockSpec((tb_eff, D), lambda i: (i, 0)),  # x tile (bf16)
                const_spec((D, D)),                           # w1 (bf16)
                const_spec((1, D)),                           # b1 (f32)
                const_spec((D, D)),                           # w2 (bf16)
                const_spec((1, D)),                           # b2 (f32)
                const_spec((1, D)),                           # w3 row (f32)
                const_spec((1, 1)),                           # b3 (f32)
            ],
            # lane-dense compact output: one (1, tb) row per batch tile
            out_specs=pl.BlockSpec((1, tb_eff), lambda i: (0, i)),
        ),
        compiler_params=pltpu.CompilerParams(
            # batch-tile axis is fully independent -> shard across TensorCores
            dimension_semantics=("parallel",),
            # NOTE: at D=128 / tb<=512 VMEM use is tiny; raise vmem_limit_bytes here if
            # tb >= 1024 or D is scaled up. For very large D, tile the (D, D) weights.
        ),
    )(xb, w1, b1, w2, b2, w3_row, b3)

    return out_row[0, :B].reshape(B, 1)


def init_params(key, input_dim):
    """Deterministic synthetic parameters (PyTorch nn.Linear-ish uniform init),
    weights stored as (in_features, out_features) for x @ W layout."""
    ks = jax.random.split(key, 6)
    bound = 1.0 / jnp.sqrt(input_dim)
    w1 = jax.random.uniform(ks[0], (input_dim, input_dim), jnp.float32, -bound, bound)
    b1 = jax.random.uniform(ks[1], (1, input_dim), jnp.float32, -bound, bound)
    w2 = jax.random.uniform(ks[2], (input_dim, input_dim), jnp.float32, -bound, bound)
    b2 = jax.random.uniform(ks[3], (1, input_dim), jnp.float32, -bound, bound)
    w3 = jax.random.uniform(ks[4], (input_dim, 1), jnp.float32, -bound, bound)
    b3 = jax.random.uniform(ks[5], (1, 1), jnp.float32, -bound, bound)
    return {"w1": w1, "b1": b1, "w2": w2, "b2": b2, "w3": w3, "b3": b3}


def reference_forward_bf16(x, p):
    """Pure-JAX reference matching the kernel's numerics (bf16 MXU inputs, f32 acc)."""
    xb = x.astype(jnp.bfloat16)
    w1 = p["w1"].astype(jnp.bfloat16)
    w2 = p["w2"].astype(jnp.bfloat16)
    h1 = jnp.maximum(jnp.dot(xb, w1, preferred_element_type=jnp.float32) + p["b1"], 0.0)
    h2 = jnp.maximum(
        jnp.dot(h1.astype(jnp.bfloat16), w2, preferred_element_type=jnp.float32) + p["b2"],
        0.0,
    )
    return jnp.dot(h2, p["w3"], preferred_element_type=jnp.float32) + p["b3"]


if __name__ == "__main__":
    key = jax.random.PRNGKey(0)
    B, D = 10, 128  # small shapes; B deliberately not a tile multiple (exercises padding)
    kx, kp = jax.random.split(key)
    x = jax.random.normal(kx, (B, D), jnp.float32)
    params = init_params(kp, D)

    out = discriminator_forward(x, params)
    out = jax.block_until_ready(out)

    ref = reference_forward_bf16(x, params)
    assert out.shape == (B, 1)
    assert jnp.allclose(out, ref, atol=2e-2, rtol=2e-2), "mismatch vs JAX reference"
    print("KERNEL_OK")
</pallas_src>

<mosaic_0001>
module attributes {stable_mosaic.version = 11 : i64} {
  func.func @_disc_kernel(%arg0: i32, %arg1: memref<16x128xbf16, #tpu.memory_space<vmem>>, %arg2: memref<128x128xbf16, #tpu.memory_space<vmem>>, %arg3: memref<1x128xf32, #tpu.memory_space<vmem>>, %arg4: memref<128x128xbf16, #tpu.memory_space<vmem>>, %arg5: memref<1x128xf32, #tpu.memory_space<vmem>>, %arg6: memref<1x128xf32, #tpu.memory_space<vmem>>, %arg7: memref<1x1xf32, #tpu.memory_space<vmem>>, %arg8: memref<1x16xf32, #tpu.memory_space<vmem>>) attributes {dimension_semantics = [#tpu.dimension_semantics<parallel>], iteration_bounds = array<i64: 1>, scalar_prefetch = 0 : i64, scratch_operands = 0 : i64, tpu.core_type = #tpu.core_type<tc>, window_params = [{transform_indices = @transform_0, window_bounds = array<i64: 16, 128>}, {pipeline_mode = #tpu.pipeline_mode<synchronous>, transform_indices = @transform_1, window_bounds = array<i64: 128, 128>}, {pipeline_mode = #tpu.pipeline_mode<synchronous>, transform_indices = @transform_2, window_bounds = array<i64: 1, 128>}, {pipeline_mode = #tpu.pipeline_mode<synchronous>, transform_indices = @transform_3, window_bounds = array<i64: 128, 128>}, {pipeline_mode = #tpu.pipeline_mode<synchronous>, transform_indices = @transform_4, window_bounds = array<i64: 1, 128>}, {pipeline_mode = #tpu.pipeline_mode<synchronous>, transform_indices = @transform_5, window_bounds = array<i64: 1, 128>}, {pipeline_mode = #tpu.pipeline_mode<synchronous>, transform_indices = @transform_6, window_bounds = array<i64: 1, 1>}, {transform_indices = @transform_7, window_bounds = array<i64: 1, 16>}]} {
    %c0 = arith.constant 0 : index
    %c0_0 = arith.constant 0 : index
    %0 = vector.load %arg1[%c0, %c0_0] : memref<16x128xbf16, #tpu.memory_space<vmem>>, vector<16x128xbf16>
    %c0_1 = arith.constant 0 : index
    %c0_2 = arith.constant 0 : index
    %1 = vector.load %arg2[%c0_1, %c0_2] : memref<128x128xbf16, #tpu.memory_space<vmem>>, vector<128x128xbf16>
    %cst = arith.constant dense<0.000000e+00> : vector<16x128xf32>
    %2 = tpu.matmul %0, %1, %cst {dimension_numbers = #tpu.dot_dimension_numbers<[1], [0], [0], [1], [0, 0, 1, 1], [], []>} : vector<16x128xbf16>, vector<128x128xbf16>, vector<16x128xf32> -> vector<16x128xf32>
    %c0_3 = arith.constant 0 : index
    %c0_4 = arith.constant 0 : index
    %3 = vector.load %arg3[%c0_3, %c0_4] : memref<1x128xf32, #tpu.memory_space<vmem>>, vector<1x128xf32>
    %4 = vector.broadcast %3 : vector<1x128xf32> to vector<16x128xf32>
    %5 = arith.addf %2, %4 : vector<16x128xf32>
    %cst_5 = arith.constant 0.000000e+00 : f32
    %6 = vector.broadcast %cst_5 : f32 to vector<16x128xf32>
    %7 = arith.maximumf %5, %6 : vector<16x128xf32>
    %8 = arith.truncf %7 : vector<16x128xf32> to vector<16x128xbf16>
    %c0_6 = arith.constant 0 : index
    %c0_7 = arith.constant 0 : index
    %9 = vector.load %arg4[%c0_6, %c0_7] : memref<128x128xbf16, #tpu.memory_space<vmem>>, vector<128x128xbf16>
    %cst_8 = arith.constant dense<0.000000e+00> : vector<16x128xf32>
    %10 = tpu.matmul %8, %9, %cst_8 {dimension_numbers = #tpu.dot_dimension_numbers<[1], [0], [0], [1], [0, 0, 1, 1], [], []>} : vector<16x128xbf16>, vector<128x128xbf16>, vector<16x128xf32> -> vector<16x128xf32>
    %c0_9 = arith.constant 0 : index
    %c0_10 = arith.constant 0 : index
    %11 = vector.load %arg5[%c0_9, %c0_10] : memref<1x128xf32, #tpu.memory_space<vmem>>, vector<1x128xf32>
    %12 = vector.broadcast %11 : vector<1x128xf32> to vector<16x128xf32>
    %13 = arith.addf %10, %12 : vector<16x128xf32>
    %cst_11 = arith.constant 0.000000e+00 : f32
    %14 = vector.broadcast %cst_11 : f32 to vector<16x128xf32>
    %15 = arith.maximumf %13, %14 : vector<16x128xf32>
    %c0_12 = arith.constant 0 : index
    %c0_13 = arith.constant 0 : index
    %16 = vector.load %arg6[%c0_12, %c0_13] : memref<1x128xf32, #tpu.memory_space<vmem>>, vector<1x128xf32>
    "tpu.trace_start"() <{level = 10 : i32, message = "od,td->ot"}> : () -> ()
    %cst_14 = arith.constant dense<0.000000e+00> : vector<1x16xf32>
    %17 = tpu.matmul %16, %15, %cst_14 {dimension_numbers = #tpu.dot_dimension_numbers<[1], [1], [0], [0], [0, 0, 1, 0], [], []>} : vector<1x128xf32>, vector<16x128xf32>, vector<1x16xf32> -> vector<1x16xf32>
    "tpu.trace_stop"() : () -> ()
    %c0_15 = arith.constant 0 : index
    %c0_16 = arith.constant 0 : index
    %18 = vector.load %arg7[%c0_15, %c0_16] : memref<1x1xf32, #tpu.memory_space<vmem>>, vector<1x1xf32>
    %19 = vector.broadcast %18 : vector<1x1xf32> to vector<1x16xf32>
    %20 = arith.addf %17, %19 : vector<1x16xf32>
    %c0_17 = arith.constant 0 : index
    %c0_18 = arith.constant 0 : index
    %21 = vector.load %arg8[%c0_17, %c0_18] : memref<1x16xf32, #tpu.memory_space<vmem>>, vector<1x16xf32>
    tpu.vector_store %arg8[%c0_17, %c0_18], %20 {strides = array<i32>} : memref<1x16xf32, #tpu.memory_space<vmem>>, vector<1x16xf32>,
    return
  }
  func.func @transform_0(%arg0: i32) -> (i32, i32) {
    %c0_i32 = arith.constant 0 : i32
    %c0_i32_0 = arith.constant 0 : i32
    return %arg0, %c0_i32 : i32, i32
  }
  func.func @transform_1(%arg0: i32) -> (i32, i32) {
    %c0_i32 = arith.constant 0 : i32
    %c0_i32_0 = arith.constant 0 : i32
    %c0_i32_1 = arith.constant 0 : i32
    return %c0_i32, %c0_i32_0 : i32, i32
  }
  func.func @transform_2(%arg0: i32) -> (i32, i32) {
    %c0_i32 = arith.constant 0 : i32
    %c0_i32_0 = arith.constant 0 : i32
    %c0_i32_1 = arith.constant 0 : i32
    return %c0_i32, %c0_i32_0 : i32, i32
  }
  func.func @transform_3(%arg0: i32) -> (i32, i32) {
    %c0_i32 = arith.constant 0 : i32
    %c0_i32_0 = arith.constant 0 : i32
    %c0_i32_1 = arith.constant 0 : i32
    return %c0_i32, %c0_i32_0 : i32, i32
  }
  func.func @transform_4(%arg0: i32) -> (i32, i32) {
    %c0_i32 = arith.constant 0 : i32
    %c0_i32_0 = arith.constant 0 : i32
    %c0_i32_1 = arith.constant 0 : i32
    return %c0_i32, %c0_i32_0 : i32, i32
  }
  func.func @transform_5(%arg0: i32) -> (i32, i32) {
    %c0_i32 = arith.constant 0 : i32
    %c0_i32_0 = arith.constant 0 : i32
    %c0_i32_1 = arith.constant 0 : i32
    return %c0_i32, %c0_i32_0 : i32, i32
  }
  func.func @transform_6(%arg0: i32) -> (i32, i32) {
    %c0_i32 = arith.constant 0 : i32
    %c0_i32_0 = arith.constant 0 : i32
    %c0_i32_1 = arith.constant 0 : i32
    return %c0_i32, %c0_i32_0 : i32, i32
  }
  func.func @transform_7(%arg0: i32) -> (i32, i32) {
    %c0_i32 = arith.constant 0 : i32
    %c0_i32_0 = arith.constant 0 : i32
    return %c0_i32, %arg0 : i32, i32
  }
}

</mosaic_0001>

<bundles_post_ra>
// kernel: tpu_custom_call.1
= control target key start
LH: loop header
LB: loop body
LE: loop exit
PB: predicated region body
PF: predicated region fallthrough
CT: control target
= control target key end

     0   :  { %s748_s0 = inlined_call_operand.hbm [shape: bf16[16,128], index: 0, kind: input, shape index: {}]   ;;  %s749_s1 = inlined_call_operand.hbm [shape: bf16[128,128], index: 1, kind: input, shape index: {}]   ;;  %s750_s2 = inlined_call_operand.vmem [shape: f32[1,128], index: 2, kind: input, shape index: {}]   ;;  %s751_s3 = inlined_call_operand.hbm [shape: bf16[128,128], index: 3, kind: input, shape index: {}]   ;;  %s752_s4 = inlined_call_operand.vmem [shape: f32[1,128], index: 4, kind: input, shape index: {}]   ;;  %s753_s5 = inlined_call_operand.vmem [shape: f32[1,128], index: 5, kind: input, shape index: {}]   ;;  %s754_s6 = inlined_call_operand.<no memory space> [shape: f32[1,1], index: 6, kind: input, shape index: {}]   ;;  %s755_s7 = inlined_call_operand.hbm [shape: f32[1,16], index: 7, kind: output, shape index: {}]  }
   0x1   :  { %v12_v0 = vstv %s754_s6 }
   0x2   :  { %13 = vst [vmem:[#allocation2] sm:$0x1] %v12_v0 }
   0x3   :  { %14 = vsyncpa [#allocation4], 0 }
   0x4   :  { %15 = vsyncpa [#allocation7], 0 }
   0x5   :  { %16 = vsyncpa [#allocation5], 0  ;;  %s619_s26 = smov [#allocation6]   ;;  %s620_s28 = smov [#allocation3]  }
   0x6   :  { %s34_s27 = sshll.u32 %s619_s26, 4  ;;  %s22_s29 = sshll.u32 %s620_s28, 4  ;;  %s35_s27 = int_to_ptr.vmem [resolvable:$true] %s34_s27  ;;  %s672_s29 = int_to_ptr.vmem [resolvable:$true] %s22_s29 }
   0x7   :  { %s525_s9 = scalar_lea.hbm %s749_s1, 1024 }
   0x8   :  { %p526_p0 = scmp.ne.s32.totalorder %s749_s1, %s525_s9  ;;  %p529_p1 = scmp.lt.u32.totalorder %s525_s9, %s749_s1 }
   0xa   :  { %p531_p2 = pnand %p529_p1, %p526_p0 }
   0xc   :  { %534 = shalt.err (!%p531_p2)
}
   0xd   :  { %s535_s13 = scalar_lea.vmem %s35_s27, 1024  ;;  %p540_p4 = scmp.lt.s32.totalorder %s35_s27, %s35_s27 }
   0xe   :  { %p536_p3 = scmp.ne.s32.totalorder %s35_s27, %s535_s13  ;;  %p541_p5 = scmp.lt.s32.totalorder %s535_s13, %s535_s13 }
  0x10   :  { %p542_p6 = por %p541_p5, %p540_p4 }
  0x12   :  { %p543_p7 = pnand %p542_p6, %p536_p3 }
  0x14   :  { %546 = shalt.err (!%p543_p7)
}
  0x15   :  { %s621_s14 = smov 64   ;;  %s622_s15 = smov 4  }
  0x16   :  { %40 = dma.hbm_to_vmem [thread:$0]  %s749_s1, 1024, %s35_s27, [#allocation7], %s621_s14, %s621_s14, %s622_s15  }
  0x17   :  { %s547_s20 = scalar_lea.hbm %s748_s0, 128 }
  0x18   :  { %p548_p8 = scmp.ne.s32.totalorder %s748_s0, %s547_s20  ;;  %p551_p9 = scmp.lt.u32.totalorder %s547_s20, %s748_s0 }
  0x1a   :  { %p553_p10 = pnand %p551_p9, %p548_p8 }
  0x1c   :  { %556 = shalt.err (!%p553_p10)
}
  0x1d   :  { %s557_s25 = scalar_lea.vmem %s672_s29, 128  ;;  %p562_p12 = scmp.lt.s32.totalorder %s672_s29, %s672_s29 }
  0x1e   :  { %p558_p11 = scmp.ne.s32.totalorder %s672_s29, %s557_s25  ;;  %p563_p13 = scmp.lt.s32.totalorder %s557_s25, %s557_s25 }
  0x20   :  { %p564_p0 = por %p563_p13, %p562_p12 }
  0x22   :  { %p565_p1 = pnand %p564_p0, %p558_p11 }
  0x24   :  { %568 = shalt.err (!%p565_p1)
}
  0x25   :  { %28 = dma.hbm_to_vmem [thread:$0]  %s748_s0, 128, %s672_s29, [#allocation4], %s621_s14, %s621_s14, %s622_s15  }
  0x26   :  { %s623_s27 = smov [#allocation8]   ;;  %s569_s9 = scalar_lea.hbm %s751_s3, 1024 }
  0x27   :  { %s48_s28 = sshll.u32 %s623_s27, 4  ;;  %p570_p2 = scmp.ne.s32.totalorder %s751_s3, %s569_s9  ;;  %s49_s28 = int_to_ptr.vmem [resolvable:$true] %s48_s28 }
  0x28   :  { %p573_p3 = scmp.lt.u32.totalorder %s569_s9, %s751_s3 }
  0x2a   :  { %p575_p4 = pnand %p573_p3, %p570_p2 }
  0x2c   :  { %578 = shalt.err (!%p575_p4)
}
  0x2d   :  { %s579_s13 = scalar_lea.vmem %s49_s28, 1024  ;;  %p584_p6 = scmp.lt.s32.totalorder %s49_s28, %s49_s28 }
  0x2e   :  { %p580_p5 = scmp.ne.s32.totalorder %s49_s28, %s579_s13  ;;  %p585_p7 = scmp.lt.s32.totalorder %s579_s13, %s579_s13 }
  0x30   :  { %p586_p8 = por %p585_p7, %p584_p6 }
  0x32   :  { %p587_p9 = pnand %p586_p8, %p580_p5 }
  0x34   :  { %590 = shalt.err (!%p587_p9)
}
  0x35   :  { %54 = dma.hbm_to_vmem [thread:$0]  %s751_s3, 1024, %s49_s28, [#allocation7], %s621_s14, %s621_s14, %s622_s15  }
  0x36   :  { %613 = dma.done.wait [#allocation4], 128  }
  0x37   :  { %614 = vsyncadd [#allocation4], 4294967168 }
  0x38   :  { %615 = dma.done.wait [#allocation7], 2048  }
  0x39   :  { %616 = vsyncadd [#allocation7], 4294965248  ;;  %v624_v1 = vmov 0.0   ;;  %vm625_vm0 = vmmov 0   ;;  %v508_v2 = vld [vmem:[#allocation6] sm:$0xff]   ;;  %v509_v3 = vld [vmem:[#allocation6 + $0x8] sm:$0xff]   ;;  %v315_v43 = vlaneseq }
  0x3a   :  { %447 = vmatprep.subr.bf16.mxu0 %v624_v1  ;;  %463 = vmatprep.mubr.msk.bf16.mxu0 %vm625_vm0, %v624_v1  ;;  %v510_v4 = vld [vmem:[#allocation6 + $0x10] sm:$0xff]   ;;  %v517_v5 = vld [vmem:[#allocation8] sm:$0xff]   ;;  %v511_v6 = vld [vmem:[#allocation6 + $0x18] sm:$0xff]   ;;  %v626_v29 = vmov 0.0|0.0   ;;  %v627_v31 = vmov 0   ;;  %vm389_vm1 = vcmask 122880  }
  0x3b   :  { %467 = vmatprep.subr.bf16.mxu1 %v624_v1  ;;  %483 = vmatprep.mubr.msk.bf16.mxu1 %vm625_vm0, %v624_v1  ;;  %v518_v7 = vld [vmem:[#allocation8 + $0x8] sm:$0xff]   ;;  %v512_v8 = vld [vmem:[#allocation6 + $0x20] sm:$0xff]   ;;  %v519_v9 = vld [vmem:[#allocation8 + $0x10] sm:$0xff]   ;;  %v316_v44 = vshrl.u32 %v315_v43, 7 }
  0x3c   :  { %448 = vmatpush3.bf16.msra.mxu0 %v508_v2  ;;  %468 = vmatpush3.bf16.msra.mxu1 %v517_v5  ;;  %v513_v10 = vld [vmem:[#allocation6 + $0x28] sm:$0xff]   ;;  %v520_v11 = vld [vmem:[#allocation8 + $0x18] sm:$0xff]   ;;  %v514_v12 = vld [vmem:[#allocation6 + $0x30] sm:$0xff]  }
  0x3d   :  { %449 = vmatprep.subr.bf16.mxu0 %v624_v1  ;;  %469 = vmatprep.subr.bf16.mxu1 %v624_v1  ;;  %v521_v13 = vld [vmem:[#allocation8 + $0x20] sm:$0xff]   ;;  %v515_v14 = vld [vmem:[#allocation6 + $0x38] sm:$0xff]   ;;  %v522_v15 = vld [vmem:[#allocation8 + $0x28] sm:$0xff]   ;;  %v317_v45 = vsub.s32 0, %v316_v44 }
  0x3e   :  { %v516_v16 = vld [vmem:[#allocation3] sm:$0xff]   ;;  %v523_v17 = vld [vmem:[#allocation8 + $0x30] sm:$0xff]   ;;  %507 = vset.pattern.permute.xlu0 %v627_v31 }
  0x3f   :  { %v524_v18 = vld [vmem:[#allocation8 + $0x38] sm:$0xff]   ;;  %v407_v19 = vld [vmem:[%s750_s2] ss:$0 sm:$0xff] }
  0x40   :  { %450 = vmatpush3.bf16.msra.mxu0 %v509_v3  ;;  %470 = vmatpush3.bf16.msra.mxu1 %v518_v7  ;;  %v309_v30 = vld [vmem:[#allocation2] sm:$0x1] }
  0x41   :  { %451 = vmatprep.subr.bf16.mxu0 %v624_v1  ;;  %471 = vmatprep.subr.bf16.mxu1 %v624_v1  ;;  %v417_v32 = vld [vmem:[%s752_s4] ss:$0 sm:$0xff]  ;;  %s628_s4 = smov [#allocation9]  }
  0x42   :  { %312 = vperm.xlu0 %507, %v309_v30   ;;  %v308_v42 = vld [vmem:[%s753_s5] sm:$0x1]  ;;  %s397_s18 = sshll.u32 %s628_s4, 4  ;;  %s398_s18 = int_to_ptr.vmem [resolvable:$true] %s397_s18 }
  0x43   :  { %s591_s19 = scalar_lea.vmem %s398_s18, 16  ;;  %s595_s20 = scalar_lea.vmem %s398_s18, 32 }
  0x44   :  { %452 = vmatpush3.bf16.msra.mxu0 %v510_v4  ;;  %472 = vmatpush3.bf16.msra.mxu1 %v519_v9  ;;  %p592_p10 = scmp.ne.s32.totalorder %s398_s18, %s591_s19  ;;  %p596_p11 = scmp.lt.s32.totalorder %s398_s18, %s398_s18 }
  0x45   :  { %453 = vmatprep.subr.bf16.mxu0 %v624_v1  ;;  %473 = vmatprep.subr.bf16.mxu1 %v624_v1  ;;  %p597_p12 = scmp.lt.s32.totalorder %s595_s20, %s591_s19 }
  0x47   :  { %p598_p13 = por %p597_p12, %p596_p11 }
  0x48   :  { %454 = vmatpush3.bf16.msra.mxu0 %v511_v6  ;;  %474 = vmatpush3.bf16.msra.mxu1 %v520_v11 }
  0x49   :  { %455 = vmatprep.subr.bf16.mxu0 %v624_v1  ;;  %475 = vmatprep.subr.bf16.mxu1 %v624_v1  ;;  %p599_p0 = pnand %p598_p13, %p592_p10 }
  0x4c   :  { %456 = vmatpush3.bf16.msra.mxu0 %v512_v8  ;;  %476 = vmatpush3.bf16.msra.mxu1 %v521_v13 }
  0x4d   :  { %457 = vmatprep.subr.bf16.mxu0 %v624_v1  ;;  %477 = vmatprep.subr.bf16.mxu1 %v624_v1 }
  0x50   :  { %458 = vmatpush3.bf16.msra.mxu0 %v513_v10  ;;  %478 = vmatpush3.bf16.msra.mxu1 %v522_v15 }
  0x51   :  { %459 = vmatprep.subr.bf16.mxu0 %v624_v1  ;;  %479 = vmatprep.subr.bf16.mxu1 %v624_v1 }
  0x54   :  { %460 = vmatpush3.bf16.msra.mxu0 %v514_v12  ;;  %480 = vmatpush3.bf16.msra.mxu1 %v523_v17 }
  0x55   :  { %461 = vmatprep.subr.bf16.mxu0 %v624_v1  ;;  %481 = vmatprep.subr.bf16.mxu1 %v624_v1 }
  0x58   :  { %462 = vmatpush3.bf16.msra.mxu0 %v515_v14  ;;  %482 = vmatpush3.bf16.msra.mxu1 %v524_v18 }
  0x59   :  { %494 = vmatprep.subr.bf16.mxu0 %v626_v29 }
  0x5b   :  { %464 = vmatmul.mubr.bf16.vlgmr.msra.gmra.mrb[0].mxu0 %v516_v16 }
  0x5c   :  { %491 = vmatprep.mubr.msk.f32.mxu0 %vm625_vm0, %v624_v1 }
  0xc1   :  { %v313_v46 = vpop.permute.xlu0 %312 }
  0xc2   :  { %v318_v47 = vrot.slane %v313_v46, %v317_v45 }
 0x12e   :  { %v184_v20 = vpop.f32.mrb[0].mxu0 }
 0x12f   :  { %v185_v21 = vadd.f32 %v407_v19, %v184_v20  ;;  %v465_v22 = vpop.f32.mrb[1].mxu0 }
 0x130   :  { %v187_v23 = vpop.f32.mrb[2].mxu0 }
 0x131   :  { %v188_v24 = vadd.f32 %v407_v19, %v187_v23  ;;  %v466_v25 = vpop.f32.mrb[3].mxu0  ;;  %v191_v26 = vmax.f32 %v185_v21, 0.0 }
 0x133   :  { %v192_v27 = vmax.f32 %v188_v24, 0.0 }
 0x135   :  { %v193_v28 = vpack.c.bf16 %v192_v27, %v191_v26 }
 0x137   :  { %484 = vmatmul.mubr.bf16.vlgmr.msra.gmra.mrb[0].mxu1 %v193_v28 }
 0x20a   :  { %v299_v33 = vpop.f32.mrb[0].mxu1 }
 0x20b   :  { %v300_v34 = vadd.f32 %v417_v32, %v299_v33  ;;  %v485_v35 = vpop.f32.mrb[1].mxu1 }
 0x20c   :  { %v302_v36 = vpop.f32.mrb[2].mxu1 }
 0x20d   :  { %v303_v37 = vadd.f32 %v417_v32, %v302_v36  ;;  %v486_v38 = vpop.f32.mrb[3].mxu1  ;;  %v306_v39 = vmax.f32 %v300_v34, 0.0 }
 0x20f   :  { %v307_v40 = vmax.f32 %v303_v37, 0.0 }
 0x211   :  { %v495_v41 = vpack.c.bf16 %v307_v40, %v306_v39 }
 0x213   :  { %496 = vmatpush3.bf16.xpose.msra.mxu0 %v495_v41 }
 0x21a   :  { %492 = vmatmul.mubr.f32.vlgmr.msra.gmra.mrb[4].mxu0 %v308_v42 }
 0x2ed   :  { %v385_v48 = vpop.f32.mrb[4].mxu0 }
 0x2ee   :  { %v386_v49 = vadd.f32 %v385_v48, %v318_v47  ;;  %v493_v50 = vpop.f32.mrb[5].mxu0 }
 0x2f0   :  { %390 = vst.msk [vmem:[#allocation9] sm:$0x1] %vm389_vm1, %v386_v49 }
 0x2f1   :  { %602 = shalt.err (!%p599_p0)
}
 0x2f2   :  { %s603_s22 = scalar_lea.hbm %s755_s7, 16 }
 0x2f3   :  { %p604_p1 = scmp.ne.s32.totalorder %s755_s7, %s603_s22  ;;  %p607_p2 = scmp.lt.u32.totalorder %s603_s22, %s755_s7 }
 0x2f5   :  { %p609_p3 = pnand %p607_p2, %p604_p1 }
 0x2f7   :  { %612 = shalt.err (!%p609_p3)
}
 0x2f8   :  { %400 = dma.vmem_to_hbm [thread:$0]  %s398_s18, 16, %s755_s7, [#allocation5]  }
 0x2f9   :  { %617 = dma.done.wait [#allocation5], 16  }
 0x2fa   :  { %618 = vsyncadd [#allocation5], 4294967280 }
 0x2fb   :  { %404 = vsyncpa [#allocation4], 1 }
 0x2fc   :  { %405 = vsyncpa [#allocation7], 1 }
 0x2fd   :  { %406 = vsyncpa [#allocation5], 1 }

</bundles_post_ra>
